<compile_context>
chip_gen: v6e
topology: v6e:2x2x1
jax: 0.10.0
libtpu: 0.0.40
codegen_flags: <defaults>
</compile_context>

<pallas_src>
import jax
import jax.numpy as jnp
from jax.experimental import pallas as pl
from jax.experimental.pallas import tpu as pltpu


def _linear_kernel(x_ref, w_ref, b_ref, o_ref):
    # VPU multiply + cross-lane reduce; f32 accumulate. No MXU for N=1.
    x = x_ref[...].astype(jnp.float32)                 # (tm, D)
    w = w_ref[...].astype(jnp.float32)                 # (1, D), broadcast over rows
    acc = jnp.sum(x * w, axis=-1, keepdims=True)       # (tm, 1) f32
    y = acc + b_ref[0, 0]                              # scalar bias read from SMEM
    # Lane-dense store: batch goes on the lane axis of the (1, tm) output block.
    o_ref[...] = y.T.astype(o_ref.dtype)


def _round_up(x, m):
    return (x + m - 1) // m * m


def lr_model_forward(x, weight, bias, *, tm=None):
    """Forward of LR_Model: y = x @ weight.T + bias.

    x:      (B, D) float32
    weight: (1, D) float32   (PyTorch nn.Linear layout: (out_features=1, D))
    bias:   (1,)   float32
    returns (B, 1) float32
    """
    B, D = x.shape
    assert weight.shape == (1, D), weight.shape

    if tm is None:
        if B <= 1024:
            # Single grid step; tm only needs sublane (8) alignment.
            tm = _round_up(max(B, 1), 8)
        else:
            # Multi-tile: tm must be a multiple of 128 (lane-dense output block).
            # Budget ~24 MiB for the double-buffered x tile so it fits v7x's
            # 64 MiB VMEM (comfortable on v6e/v5e's 128 MiB as well).
            budget = 24 * 1024 * 1024
            tm = max(128, min(1024, (budget // (2 * D * 4)) // 128 * 128))

    B_pad = _round_up(B, tm)
    if B_pad != B:
        # Zero rows only produce discarded outputs.
        x = jnp.pad(x, ((0, B_pad - B), (0, 0)))

    grid = (B_pad // tm,)
    b2d = bias.reshape(1, 1).astype(jnp.float32)

    out = pl.pallas_call(
        _linear_kernel,
        out_shape=jax.ShapeDtypeStruct((1, B_pad), x.dtype),
        grid=grid,
        in_specs=[
            # x: tiled over batch, double-buffered by the Pallas pipeline.
            pl.BlockSpec((tm, D), lambda i: (i, 0)),
            # weight: (1, D), resident across all grid steps (same block index).
            pl.BlockSpec((1, D), lambda i: (0, 0)),
            # bias: scalar in SMEM, no VMEM tile / DMA.
            pl.BlockSpec(memory_space=pltpu.MemorySpace.SMEM),
        ],
        # Lane-dense output: batch on the lane axis.
        out_specs=pl.BlockSpec((1, tm), lambda i: (0, i)),
        compiler_params=pltpu.CompilerParams(
            dimension_semantics=("parallel",),
        ),
    )(x, weight, b2d)

    # Back to the public (B, 1) shape.
    return out[0, :B].reshape(B, 1)


if __name__ == "__main__":
    key = jax.random.PRNGKey(0)
    k_x, k_w, k_b = jax.random.split(key, 3)

    B = 8           # batch
    num_input = 32  # feature dim (num_input of LR_Model)

    # Deterministic init mimicking nn.Linear's uniform(-1/sqrt(D), 1/sqrt(D)).
    bound = 1.0 / jnp.sqrt(jnp.float32(num_input))
    weight = jax.random.uniform(k_w, (1, num_input), jnp.float32, -bound, bound)
    bias = jax.random.uniform(k_b, (1,), jnp.float32, -bound, bound)

    x = jax.random.normal(k_x, (B, num_input), jnp.float32)

    out = lr_model_forward(x, weight, bias)
    out = jax.block_until_ready(out)

    # Reference in plain JAX (PyTorch semantics: x @ W.T + b).
    ref = x @ weight.T + bias
    assert out.shape == (B, 1), out.shape
    assert jnp.allclose(out, ref, atol=1e-5, rtol=1e-5), (out, ref)

    print("KERNEL_OK")
</pallas_src>

<mosaic_0001>
module attributes {stable_mosaic.version = 11 : i64} {
  func.func @_linear_kernel(%arg0: i32, %arg1: memref<8x32xf32, #tpu.memory_space<vmem>>, %arg2: memref<1x32xf32, #tpu.memory_space<vmem>>, %arg3: memref<1x1xf32, #tpu.memory_space<smem>>, %arg4: memref<1x8xf32, #tpu.memory_space<vmem>>) attributes {dimension_semantics = [#tpu.dimension_semantics<parallel>], iteration_bounds = array<i64: 1>, scalar_prefetch = 0 : i64, scratch_operands = 0 : i64, tpu.core_type = #tpu.core_type<tc>, window_params = [{transform_indices = @transform_0, window_bounds = array<i64: 8, 32>}, {pipeline_mode = #tpu.pipeline_mode<synchronous>, transform_indices = @transform_1, window_bounds = array<i64: 1, 32>}, {transform_indices = @transform_2, window_bounds = array<i64: 1, 1>}, {transform_indices = @transform_3, window_bounds = array<i64: 1, 8>}]} {
    %c0 = arith.constant 0 : index
    %c0_0 = arith.constant 0 : index
    %0 = vector.load %arg1[%c0, %c0_0] : memref<8x32xf32, #tpu.memory_space<vmem>>, vector<8x32xf32>
    %c0_1 = arith.constant 0 : index
    %c0_2 = arith.constant 0 : index
    %1 = vector.load %arg2[%c0_1, %c0_2] : memref<1x32xf32, #tpu.memory_space<vmem>>, vector<1x32xf32>
    %2 = vector.broadcast %1 : vector<1x32xf32> to vector<8x32xf32>
    %3 = arith.mulf %0, %2 : vector<8x32xf32>
    %cst = arith.constant dense<0.000000e+00> : vector<8xf32>
    %4 = vector.multi_reduction <add>, %3, %cst [1] : vector<8x32xf32> to vector<8xf32>
    %5 = vector.shape_cast %4 : vector<8xf32> to vector<8x1xf32>
    %c0_3 = arith.constant 0 : index
    %c0_4 = arith.constant 0 : index
    %6 = memref.load %arg3[%c0_3, %c0_4] : memref<1x1xf32, #tpu.memory_space<smem>>
    %7 = vector.broadcast %6 : f32 to vector<8x1xf32>
    %8 = arith.addf %5, %7 : vector<8x1xf32>
    %9 = tpu.transpose %8, [1, 0] : vector<8x1xf32> -> vector<1x8xf32>
    %c0_5 = arith.constant 0 : index
    %c0_6 = arith.constant 0 : index
    %10 = vector.load %arg4[%c0_5, %c0_6] : memref<1x8xf32, #tpu.memory_space<vmem>>, vector<1x8xf32>
    tpu.vector_store %arg4[%c0_5, %c0_6], %9 {strides = array<i32>} : memref<1x8xf32, #tpu.memory_space<vmem>>, vector<1x8xf32>,
    return
  }
  func.func @transform_0(%arg0: i32) -> (i32, i32) {
    %c0_i32 = arith.constant 0 : i32
    %c0_i32_0 = arith.constant 0 : i32
    return %arg0, %c0_i32 : i32, i32
  }
  func.func @transform_1(%arg0: i32) -> (i32, i32) {
    %c0_i32 = arith.constant 0 : i32
    %c0_i32_0 = arith.constant 0 : i32
    %c0_i32_1 = arith.constant 0 : i32
    return %c0_i32, %c0_i32_0 : i32, i32
  }
  func.func @transform_2(%arg0: i32) -> (i32, i32) {
    %c0_i32 = arith.constant 0 : i32
    %c0_i32_0 = arith.constant 0 : i32
    %c0_i32_1 = arith.constant 0 : i32
    return %c0_i32, %c0_i32_0 : i32, i32
  }
  func.func @transform_3(%arg0: i32) -> (i32, i32) {
    %c0_i32 = arith.constant 0 : i32
    %c0_i32_0 = arith.constant 0 : i32
    return %c0_i32, %arg0 : i32, i32
  }
}

</mosaic_0001>

<bundles_post_ra>
// kernel: tpu_custom_call.1
= control target key start
LH: loop header
LB: loop body
LE: loop exit
PB: predicated region body
PF: predicated region fallthrough
CT: control target
= control target key end

     0   :  { %9 = vsyncpa [#allocation4], 0  ;;  %s175_s0 = inlined_call_operand.hbm [shape: f32[8,32], index: 0, kind: input, shape index: {}]   ;;  %s176_s1 = inlined_call_operand.vmem [shape: f32[1,32], index: 1, kind: input, shape index: {}]   ;;  %s177_s2 = inlined_call_operand.<no memory space> [shape: f32[1,1], index: 2, kind: input, shape index: {}]   ;;  %s178_s3 = inlined_call_operand.hbm [shape: f32[1,8], index: 3, kind: output, shape index: {}]  }
   0x1   :  { %10 = vsyncpa [#allocation5], 0  ;;  %s141_s12 = smov [#allocation3]  }
   0x2   :  { %s17_s13 = sshll.u32 %s141_s12, 4  ;;  %s18_s13 = int_to_ptr.vmem [resolvable:$true] %s17_s13 }
   0x3   :  { %s105_s14 = scalar_lea.vmem %s18_s13, 128  ;;  %p110_p1 = scmp.lt.s32.totalorder %s18_s13, %s18_s13 }
   0x4   :  { %p106_p0 = scmp.ne.s32.totalorder %s18_s13, %s105_s14  ;;  %p111_p2 = scmp.lt.s32.totalorder %s105_s14, %s105_s14 }
   0x6   :  { %p112_p3 = por %p111_p2, %p110_p1 }
   0x8   :  { %p113_p4 = pnand %p112_p3, %p106_p0 }
   0xa   :  { %116 = shalt.err (!%p113_p4)
}
   0xb   :  { %20 = dma.hbm_to_vmem [thread:$0]  %s175_s0, 128, %s18_s13, [#allocation4]  }
   0xc   :  { %137 = dma.done.wait [#allocation4], 128  }
   0xd   :  { %138 = vsyncadd [#allocation4], 4294967168  ;;  %v28_v0 = vld [vmem:[#allocation3] sm:$0xff]  ;;  %vm37_vm0 = vcmask 261120   ;;  %v42_v4 = vstv %s177_s2  ;;  %s142_s21 = smov [#allocation6]   ;;  %vm76_vm1 = vcmask 57344  }
   0xe   :  { %v93_v1 = vld [vmem:[%s176_s1] ss:$0 sm:$0xff]  ;;  %s84_s0 = sshll.u32 %s142_s21, 4  ;;  %s85_s0 = int_to_ptr.vmem [resolvable:$true] %s84_s0 }
   0xf   :  { %v36_v2 = vmul.f32 %v93_v1, %v28_v0  ;;  %s117_s22 = scalar_lea.vmem %s85_s0, 16  ;;  %s121_s1 = scalar_lea.vmem %s85_s0, 32 }
  0x10   :  { %p118_p5 = scmp.ne.s32.totalorder %s85_s0, %s117_s22  ;;  %p122_p6 = scmp.lt.s32.totalorder %s85_s0, %s85_s0 }
  0x11   :  { %v38_v3 = vsel %vm37_vm0, %v36_v2, 0.0  ;;  %p123_p7 = scmp.lt.s32.totalorder %s121_s1, %s117_s22 }
  0x12   :  { %39 = vadd.xlane.f32.xlu0 %v38_v3 }
  0x13   :  { %p124_p8 = por %p123_p7, %p122_p6 }
  0x15   :  { %p125_p9 = pnand %p124_p8, %p118_p5 }
  0x9b   :  { %v40_v5 = vpop.xlane.xlu0 %39 }
  0x9c   :  { %v43_v6 = vadd.f32 %v42_v4, %v40_v5 }
  0x9e   :  { %44 = vxpose.xlu0.b32.start.end [1/1] (short) (narrow) %v43_v6, 8 }
 0x11a   :  { %v60_v7 = vpop.trf.xlu0 }
 0x11b   :  { %77 = vst.msk [vmem:[#allocation6] sm:$0x1] %vm76_vm1, %v60_v7 }
 0x11c   :  { %128 = shalt.err (!%p125_p9)
}
 0x11d   :  { %87 = dma.vmem_to_hbm [thread:$0]  %s85_s0, 16, %s178_s3, [#allocation5]  }
 0x11e   :  { %139 = dma.done.wait [#allocation5], 16  }
 0x11f   :  { %140 = vsyncadd [#allocation5], 4294967280 }
 0x120   :  { %91 = vsyncpa [#allocation4], 1 }
 0x121   :  { %92 = vsyncpa [#allocation5], 1 }

</bundles_post_ra>
